<compile_context>
chip_gen: v5e
topology: v5e:2x2
jax: 0.10.0
libtpu: 0.0.40
codegen_flags: <defaults>
</compile_context>

<pallas_src>
import functools
import math

import jax
import jax.numpy as jnp
from jax.experimental import pallas as pl
from jax.experimental.pallas import tpu as pltpu

_MIB = 1024 * 1024


# ----------------------------------------------------------------------------
# Kernel body: one (batch-tile, out-tile, k-tile) grid step.
#   x:        (tb, tk)  f32
#   Wmu_t:    (tk, tn)  bf16 or f32  (pre-transposed: in_features x out_features)
#   Wsig_t:   (tk, tn)  bf16 or f32
#   eps_in:   (1, tk)   f32
#   eps_out:  (1, tn)   f32
#   bmu,bsig: (1, tn)   f32
#   out:      (tb, tn)  f32  -- accumulator, resident across the K grid axis
# ----------------------------------------------------------------------------
def _noisy_linear_kernel(x_ref, wmu_ref, wsig_ref, eps_in_ref, eps_out_ref,
                         bmu_ref, bsig_ref, o_ref, *, use_bf16):
    k = pl.program_id(2)

    @pl.when(k == 0)
    def _init():
        o_ref[...] = jnp.zeros_like(o_ref)

    x = x_ref[...]                                  # (tb, tk)
    x_noise = x * eps_in_ref[...]                   # scale in f32 before any downcast

    if use_bf16:
        x = x.astype(jnp.bfloat16)
        x_noise = x_noise.astype(jnp.bfloat16)

    # y = x @ Wmu + ((x * eps_in) @ Wsig) * eps_out   (noise kept factorized)
    y_mu = jnp.dot(x, wmu_ref[...], preferred_element_type=jnp.float32)
    y_sig = jnp.dot(x_noise, wsig_ref[...], preferred_element_type=jnp.float32)
    o_ref[...] += y_mu + y_sig * eps_out_ref[...]

    @pl.when(k == pl.num_programs(2) - 1)
    def _finalize():
        o_ref[...] += bmu_ref[...] + bsig_ref[...] * eps_out_ref[...]


# ----------------------------------------------------------------------------
# Generation-aware tile / VMEM budgeting
# ----------------------------------------------------------------------------
def _tpu_vmem_and_cores():
    """Best-effort query of per-core VMEM capacity and TensorCores per chip."""
    vmem_bytes = 128 * _MIB
    num_cores = 1
    try:
        info = pltpu.get_tpu_info()
        v = getattr(info, "vmem_capacity_bytes", None)
        if v:
            vmem_bytes = int(v)
    except Exception:
        pass
    try:
        kind = jax.devices()[0].device_kind.lower()
        if "v7" in kind:
            vmem_bytes = min(vmem_bytes, 64 * _MIB)   # v7x: 64 MiB per TC
            num_cores = 2
    except Exception:
        pass
    return vmem_bytes, num_cores


def _divisor_tiles(dim, candidates):
    out = [t for t in candidates if t <= dim and dim % t == 0]
    return out or [dim]   # full extent also satisfies the (8,128)-or-full rule


def _vmem_footprint_bytes(tb, tk, tn, w_itemsize):
    """Double-buffered per-step VMEM footprint (f32 except weights)."""
    x_b = 2 * 4 * tb * tk                      # x tile, double-buffered
    w_b = 2 * 2 * w_itemsize * tk * tn         # two weight tiles, double-buffered
    ei_b = 2 * 4 * 8 * tk                      # (1, tk) eps_in row, 8-sublane pad
    ro_b = 3 * 2 * 4 * 8 * tn                  # eps_out, bias_mu, bias_sigma rows
    o_b = 2 * 4 * tb * tn                      # output/accumulator tile
    return x_b + w_b + ei_b + ro_b + o_b


def _select_tiles(B, K, N, w_itemsize, vmem_budget, num_cores):
    # Batch tile: full batch when small, otherwise a 'parallel' batch axis.
    if B <= 512:
        tb = B
    else:
        tb = next((t for t in (512, 256, 128, 64, 32, 16, 8) if B % t == 0), B)

    tn_cands = _divisor_tiles(N, (1024, 512, 256, 128))
    tk_cands = _divisor_tiles(K, (2048, 1024, 512, 256, 128))
    tile_budget = int(0.85 * vmem_budget)

    chosen = None
    for tn_c in tn_cands:                       # prefer the biggest tiles that fit
        for tk_c in tk_cands:
            if _vmem_footprint_bytes(tb, tk_c, tn_c, w_itemsize) <= tile_budget:
                chosen = (tn_c, tk_c)
                break
        if chosen is not None:
            break
    if chosen is None:
        chosen = (tn_cands[-1], tk_cands[-1])
    tn, tk = chosen

    # v7x (2 TensorCores): keep >=2 parallel tiles so both cores get work.
    if num_cores >= 2 and (B // tb) * (N // tn) < 2:
        if N // tn == 1 and tn % 256 == 0:
            tn //= 2
    return tb, tn, tk


# ----------------------------------------------------------------------------
# Forward wrapper
# ----------------------------------------------------------------------------
def noisy_linear_forward(x, weight_mu_t, weight_sigma_t, bias_mu, bias_sigma,
                         eps_in, eps_out, *, use_bf16=True,
                         tile_b=None, tile_n=None, tile_k=None):
    """NoisyLinear forward pass.

    x:              (B, in_features)               f32
    weight_mu_t:    (in_features, out_features)    f32 or bf16 (pre-transposed)
    weight_sigma_t: (in_features, out_features)    f32 or bf16
    bias_mu/sigma:  (out_features,)
    eps_in:         (in_features,)   factorized noise (== epsilon_in)
    eps_out:        (out_features,)  factorized noise (== bias_epsilon)
    """
    B, K = x.shape
    K2, N = weight_mu_t.shape
    assert K == K2 and weight_sigma_t.shape == (K, N)

    x = x.astype(jnp.float32)
    eps_in2 = eps_in.reshape(1, K).astype(jnp.float32)
    eps_out2 = eps_out.reshape(1, N).astype(jnp.float32)
    bias_mu2 = bias_mu.reshape(1, N).astype(jnp.float32)
    bias_sigma2 = bias_sigma.reshape(1, N).astype(jnp.float32)

    vmem_bytes, num_cores = _tpu_vmem_and_cores()
    vmem_budget = max(16 * _MIB,
                      min(int(0.65 * vmem_bytes), vmem_bytes - 16 * _MIB))

    w_itemsize = weight_mu_t.dtype.itemsize
    tb_a, tn_a, tk_a = _select_tiles(B, K, N, w_itemsize, vmem_budget, num_cores)
    tb = tile_b if tile_b is not None else tb_a
    tn = tile_n if tile_n is not None else tn_a
    tk = tile_k if tile_k is not None else tk_a
    assert B % tb == 0 and N % tn == 0 and K % tk == 0

    grid = (B // tb, N // tn, K // tk)
    footprint = _vmem_footprint_bytes(tb, tk, tn, w_itemsize)
    vmem_limit = int(min(vmem_bytes - 8 * _MIB,
                         max(32 * _MIB, footprint + 8 * _MIB)))

    kernel = functools.partial(_noisy_linear_kernel, use_bf16=use_bf16)

    cost = pl.CostEstimate(
        flops=4 * B * K * N + 2 * B * K + 3 * B * N,
        transcendentals=0,
        bytes_accessed=(4 * B * K + 2 * w_itemsize * K * N
                        + 4 * (K + 3 * N) + 4 * B * N),
    )

    return pl.pallas_call(
        kernel,
        out_shape=jax.ShapeDtypeStruct((B, N), jnp.float32),
        grid_spec=pltpu.PrefetchScalarGridSpec(
            num_scalar_prefetch=0,
            grid=grid,
            in_specs=[
                pl.BlockSpec((tb, tk), lambda b, j, k: (b, k)),   # x
                pl.BlockSpec((tk, tn), lambda b, j, k: (k, j)),   # weight_mu_t
                pl.BlockSpec((tk, tn), lambda b, j, k: (k, j)),   # weight_sigma_t
                pl.BlockSpec((1, tk), lambda b, j, k: (0, k)),    # eps_in  (row)
                pl.BlockSpec((1, tn), lambda b, j, k: (0, j)),    # eps_out (row)
                pl.BlockSpec((1, tn), lambda b, j, k: (0, j)),    # bias_mu
                pl.BlockSpec((1, tn), lambda b, j, k: (0, j)),    # bias_sigma
            ],
            out_specs=pl.BlockSpec((tb, tn), lambda b, j, k: (b, j)),
        ),
        compiler_params=pltpu.CompilerParams(
            dimension_semantics=("parallel", "parallel", "arbitrary"),
            vmem_limit_bytes=vmem_limit,
        ),
        cost_estimate=cost,
    )(x, weight_mu_t, weight_sigma_t, eps_in2, eps_out2, bias_mu2, bias_sigma2)


# ----------------------------------------------------------------------------
# Parameter / noise construction mirroring the PyTorch __init__ / reset_noise.
# (JAX RNG instead of torch RNG; weights stored pre-transposed (in, out).)
# ----------------------------------------------------------------------------
def _scale_noise(key, size):
    x = jax.random.normal(key, (size,), dtype=jnp.float32)
    return jnp.sign(x) * jnp.sqrt(jnp.abs(x))


def make_noisy_linear_params(key, in_features, out_features, sigma_init=0.5):
    k_wmu, k_bmu, k_eps_in, k_eps_out = jax.random.split(key, 4)
    mu_range = 1.0 / math.sqrt(in_features)
    weight_mu_t = jax.random.uniform(
        k_wmu, (in_features, out_features),
        minval=-mu_range, maxval=mu_range, dtype=jnp.float32)
    weight_sigma_t = jnp.full((in_features, out_features),
                              sigma_init / math.sqrt(in_features), jnp.float32)
    bias_mu = jax.random.uniform(
        k_bmu, (out_features,),
        minval=-mu_range, maxval=mu_range, dtype=jnp.float32)
    bias_sigma = jnp.full((out_features,),
                          sigma_init / math.sqrt(out_features), jnp.float32)
    eps_in = _scale_noise(k_eps_in, in_features)      # epsilon_in
    eps_out = _scale_noise(k_eps_out, out_features)   # epsilon_out (== bias_epsilon)
    return dict(weight_mu_t=weight_mu_t, weight_sigma_t=weight_sigma_t,
                bias_mu=bias_mu, bias_sigma=bias_sigma,
                eps_in=eps_in, eps_out=eps_out)


def get_noise_level(weight_sigma_t, bias_sigma):
    # Plain JAX (trivially small); mirrors NoisyLinear.get_noise_level.
    return jnp.abs(weight_sigma_t).mean() + jnp.abs(bias_sigma).mean()


if __name__ == "__main__":
    key = jax.random.PRNGKey(0)
    k_params, k_x = jax.random.split(key)

    batch, in_features, out_features = 16, 256, 384
    params = make_noisy_linear_params(k_params, in_features, out_features, 0.5)
    x = jax.random.normal(k_x, (batch, in_features), dtype=jnp.float32)

    wmu_f32 = params["weight_mu_t"]
    wsig_f32 = params["weight_sigma_t"]
    bmu, bsig = params["bias_mu"], params["bias_sigma"]
    eps_in, eps_out = params["eps_in"], params["eps_out"]

    # Production storage: bf16 weights halve the dominant HBM stream.
    wmu_bf16 = wmu_f32.astype(jnp.bfloat16)
    wsig_bf16 = wsig_f32.astype(jnp.bfloat16)

    # --- Pure-JAX references ------------------------------------------------
    bias = bmu + bsig * eps_out
    w_eff = wmu_f32 + wsig_f32 * jnp.outer(eps_in, eps_out)
    ref_f32 = x @ w_eff + bias
    ref_bf16 = (
        jnp.dot(x.astype(jnp.bfloat16), wmu_bf16,
                preferred_element_type=jnp.float32)
        + jnp.dot((x * eps_in[None, :]).astype(jnp.bfloat16), wsig_bf16,
                  preferred_element_type=jnp.float32) * eps_out[None, :]
        + bias)

    # --- Pallas kernel ------------------------------------------------------
    # 1) Production path: bf16 weight streaming, auto (budgeted) tile selection.
    out_fast = noisy_linear_forward(
        x, wmu_bf16, wsig_bf16, bmu, bsig, eps_in, eps_out, use_bf16=True)
    # 2) Same math, explicit small tiles so all three grid axes (batch, out, K)
    #    and the accumulator init/finalize path are exercised.
    out_tiled = noisy_linear_forward(
        x, wmu_bf16, wsig_bf16, bmu, bsig, eps_in, eps_out,
        use_bf16=True, tile_b=8, tile_n=128, tile_k=128)
    # 3) f32-parity path (f32 weights, no bf16 cast).
    out_exact = noisy_linear_forward(
        x, wmu_f32, wsig_f32, bmu, bsig, eps_in, eps_out, use_bf16=False)

    out_fast, out_tiled, out_exact = jax.block_until_ready(
        (out_fast, out_tiled, out_exact))

    assert out_fast.shape == (batch, out_features)
    assert out_tiled.shape == (batch, out_features)
    assert out_exact.shape == (batch, out_features)

    # Tight checks against the precision-matched (bf16 weights, f32 acc) reference.
    assert jnp.allclose(out_fast, ref_bf16, atol=2e-3, rtol=2e-3)
    assert jnp.allclose(out_tiled, ref_bf16, atol=2e-3, rtol=2e-3)
    # Loose checks against the full-f32 reference (bf16 rounding only).
    assert jnp.allclose(out_fast, ref_f32, atol=3e-2, rtol=3e-2)
    assert jnp.allclose(out_exact, ref_f32, atol=2e-2, rtol=2e-2)

    print("KERNEL_OK")
</pallas_src>

<mosaic_0001>
module attributes {stable_mosaic.version = 11 : i64} {
  func.func @_noisy_linear_kernel(%arg0: i32, %arg1: i32, %arg2: i32, %arg3: memref<16x256xf32, #tpu.memory_space<vmem>>, %arg4: memref<256x128xbf16, #tpu.memory_space<vmem>>, %arg5: memref<256x128xbf16, #tpu.memory_space<vmem>>, %arg6: memref<1x256xf32, #tpu.memory_space<vmem>>, %arg7: memref<1x128xf32, #tpu.memory_space<vmem>>, %arg8: memref<1x128xf32, #tpu.memory_space<vmem>>, %arg9: memref<1x128xf32, #tpu.memory_space<vmem>>, %arg10: memref<16x128xf32, #tpu.memory_space<vmem>>) attributes {dimension_semantics = [#tpu.dimension_semantics<parallel>, #tpu.dimension_semantics<parallel>, #tpu.dimension_semantics<arbitrary>], iteration_bounds = array<i64: 1, 3, 1>, scalar_prefetch = 0 : i64, scratch_operands = 0 : i64, tpu.core_type = #tpu.core_type<tc>, window_params = [{transform_indices = @transform_0, window_bounds = array<i64: 16, 256>}, {transform_indices = @transform_1, window_bounds = array<i64: 256, 128>}, {transform_indices = @transform_2, window_bounds = array<i64: 256, 128>}, {transform_indices = @transform_3, window_bounds = array<i64: 1, 256>}, {transform_indices = @transform_4, window_bounds = array<i64: 1, 128>}, {transform_indices = @transform_5, window_bounds = array<i64: 1, 128>}, {transform_indices = @transform_6, window_bounds = array<i64: 1, 128>}, {transform_indices = @transform_7, window_bounds = array<i64: 16, 128>}]} {
    %c0_i32 = arith.constant 0 : i32
    %0 = arith.cmpi eq, %arg2, %c0_i32 : i32
    %1 = arith.extui %0 : i1 to i32
    %c0_i32_0 = arith.constant 0 : i32
    %2 = arith.cmpi ne, %1, %c0_i32_0 : i32
    scf.if %2 {
      %cst_17 = arith.constant 0.000000e+00 : f32
      %23 = vector.broadcast %cst_17 : f32 to vector<16x128xf32>
      %c0_18 = arith.constant 0 : index
      %c0_19 = arith.constant 0 : index
      %24 = vector.load %arg10[%c0_18, %c0_19] : memref<16x128xf32, #tpu.memory_space<vmem>>, vector<16x128xf32>
      tpu.vector_store %arg10[%c0_18, %c0_19], %23 {strides = array<i32>} : memref<16x128xf32, #tpu.memory_space<vmem>>, vector<16x128xf32>,
    } else {
    }
    %c0 = arith.constant 0 : index
    %c0_1 = arith.constant 0 : index
    %3 = vector.load %arg3[%c0, %c0_1] : memref<16x256xf32, #tpu.memory_space<vmem>>, vector<16x256xf32>
    %c0_2 = arith.constant 0 : index
    %c0_3 = arith.constant 0 : index
    %4 = vector.load %arg6[%c0_2, %c0_3] : memref<1x256xf32, #tpu.memory_space<vmem>>, vector<1x256xf32>
    %5 = vector.broadcast %4 : vector<1x256xf32> to vector<16x256xf32>
    %6 = arith.mulf %3, %5 : vector<16x256xf32>
    %7 = arith.truncf %3 : vector<16x256xf32> to vector<16x256xbf16>
    %8 = arith.truncf %6 : vector<16x256xf32> to vector<16x256xbf16>
    %c0_4 = arith.constant 0 : index
    %c0_5 = arith.constant 0 : index
    %9 = vector.load %arg4[%c0_4, %c0_5] : memref<256x128xbf16, #tpu.memory_space<vmem>>, vector<256x128xbf16>
    %cst = arith.constant dense<0.000000e+00> : vector<16x128xf32>
    %10 = tpu.matmul %7, %9, %cst {dimension_numbers = #tpu.dot_dimension_numbers<[1], [0], [0], [1], [0, 0, 1, 1], [], []>} : vector<16x256xbf16>, vector<256x128xbf16>, vector<16x128xf32> -> vector<16x128xf32>
    %c0_6 = arith.constant 0 : index
    %c0_7 = arith.constant 0 : index
    %11 = vector.load %arg5[%c0_6, %c0_7] : memref<256x128xbf16, #tpu.memory_space<vmem>>, vector<256x128xbf16>
    %cst_8 = arith.constant dense<0.000000e+00> : vector<16x128xf32>
    %12 = tpu.matmul %8, %11, %cst_8 {dimension_numbers = #tpu.dot_dimension_numbers<[1], [0], [0], [1], [0, 0, 1, 1], [], []>} : vector<16x256xbf16>, vector<256x128xbf16>, vector<16x128xf32> -> vector<16x128xf32>
    %c0_9 = arith.constant 0 : index
    %c0_10 = arith.constant 0 : index
    %13 = vector.load %arg10[%c0_9, %c0_10] : memref<16x128xf32, #tpu.memory_space<vmem>>, vector<16x128xf32>
    %c0_11 = arith.constant 0 : index
    %c0_12 = arith.constant 0 : index
    %14 = vector.load %arg7[%c0_11, %c0_12] : memref<1x128xf32, #tpu.memory_space<vmem>>, vector<1x128xf32>
    %15 = vector.broadcast %14 : vector<1x128xf32> to vector<16x128xf32>
    %16 = arith.mulf %12, %15 : vector<16x128xf32>
    %17 = arith.addf %10, %16 : vector<16x128xf32>
    %18 = arith.addf %13, %17 : vector<16x128xf32>
    %c0_13 = arith.constant 0 : index
    %c0_14 = arith.constant 0 : index
    %19 = vector.load %arg10[%c0_13, %c0_14] : memref<16x128xf32, #tpu.memory_space<vmem>>, vector<16x128xf32>
    tpu.vector_store %arg10[%c0_13, %c0_14], %18 {strides = array<i32>} : memref<16x128xf32, #tpu.memory_space<vmem>>, vector<16x128xf32>,
    %c0_i32_15 = arith.constant 0 : i32
    %20 = arith.cmpi eq, %arg2, %c0_i32_15 : i32
    %21 = arith.extui %20 : i1 to i32
    %c0_i32_16 = arith.constant 0 : i32
    %22 = arith.cmpi ne, %21, %c0_i32_16 : i32
    scf.if %22 {
      %c0_17 = arith.constant 0 : index
      %c0_18 = arith.constant 0 : index
      %23 = vector.load %arg10[%c0_17, %c0_18] : memref<16x128xf32, #tpu.memory_space<vmem>>, vector<16x128xf32>
      %c0_19 = arith.constant 0 : index
      %c0_20 = arith.constant 0 : index
      %24 = vector.load %arg8[%c0_19, %c0_20] : memref<1x128xf32, #tpu.memory_space<vmem>>, vector<1x128xf32>
      %c0_21 = arith.constant 0 : index
      %c0_22 = arith.constant 0 : index
      %25 = vector.load %arg9[%c0_21, %c0_22] : memref<1x128xf32, #tpu.memory_space<vmem>>, vector<1x128xf32>
      %c0_23 = arith.constant 0 : index
      %c0_24 = arith.constant 0 : index
      %26 = vector.load %arg7[%c0_23, %c0_24] : memref<1x128xf32, #tpu.memory_space<vmem>>, vector<1x128xf32>
      %27 = arith.mulf %25, %26 : vector<1x128xf32>
      %28 = arith.addf %24, %27 : vector<1x128xf32>
      %29 = vector.broadcast %28 : vector<1x128xf32> to vector<16x128xf32>
      %30 = arith.addf %23, %29 : vector<16x128xf32>
      %c0_25 = arith.constant 0 : index
      %c0_26 = arith.constant 0 : index
      %31 = vector.load %arg10[%c0_25, %c0_26] : memref<16x128xf32, #tpu.memory_space<vmem>>, vector<16x128xf32>
      tpu.vector_store %arg10[%c0_25, %c0_26], %30 {strides = array<i32>} : memref<16x128xf32, #tpu.memory_space<vmem>>, vector<16x128xf32>,
    } else {
    }
    return
  }
  func.func @transform_0(%arg0: i32, %arg1: i32, %arg2: i32) -> (i32, i32) {
    %c0_i32 = arith.constant 0 : i32
    return %arg0, %arg2 : i32, i32
  }
  func.func @transform_1(%arg0: i32, %arg1: i32, %arg2: i32) -> (i32, i32) {
    %c0_i32 = arith.constant 0 : i32
    return %arg2, %arg1 : i32, i32
  }
  func.func @transform_2(%arg0: i32, %arg1: i32, %arg2: i32) -> (i32, i32) {
    %c0_i32 = arith.constant 0 : i32
    return %arg2, %arg1 : i32, i32
  }
  func.func @transform_3(%arg0: i32, %arg1: i32, %arg2: i32) -> (i32, i32) {
    %c0_i32 = arith.constant 0 : i32
    %c0_i32_0 = arith.constant 0 : i32
    return %c0_i32, %arg2 : i32, i32
  }
  func.func @transform_4(%arg0: i32, %arg1: i32, %arg2: i32) -> (i32, i32) {
    %c0_i32 = arith.constant 0 : i32
    %c0_i32_0 = arith.constant 0 : i32
    return %c0_i32, %arg1 : i32, i32
  }
  func.func @transform_5(%arg0: i32, %arg1: i32, %arg2: i32) -> (i32, i32) {
    %c0_i32 = arith.constant 0 : i32
    %c0_i32_0 = arith.constant 0 : i32
    return %c0_i32, %arg1 : i32, i32
  }
  func.func @transform_6(%arg0: i32, %arg1: i32, %arg2: i32) -> (i32, i32) {
    %c0_i32 = arith.constant 0 : i32
    %c0_i32_0 = arith.constant 0 : i32
    return %c0_i32, %arg1 : i32, i32
  }
  func.func @transform_7(%arg0: i32, %arg1: i32, %arg2: i32) -> (i32, i32) {
    %c0_i32 = arith.constant 0 : i32
    return %arg0, %arg1 : i32, i32
  }
}

</mosaic_0001>

<bundles_post_ra>
// kernel: tpu_custom_call.1
= control target key start
LH: loop header
LB: loop body
LE: loop exit
PB: predicated region body
PF: predicated region fallthrough
CT: control target
= control target key end

     0   :  { %s1940_s0 = inlined_call_operand.hbm [shape: f32[16,256], index: 0, kind: input, shape index: {}]   ;;  %s1941_s1 = inlined_call_operand.hbm [shape: bf16[256,384], index: 1, kind: input, shape index: {}]   ;;  %s1942_s2 = inlined_call_operand.hbm [shape: bf16[256,384], index: 2, kind: input, shape index: {}]   ;;  %s1943_s3 = inlined_call_operand.hbm [shape: f32[1,256], index: 3, kind: input, shape index: {}]   ;;  %s1944_s4 = inlined_call_operand.vmem [shape: f32[1,384], index: 4, kind: input, shape index: {}]   ;;  %s1945_s5 = inlined_call_operand.hbm [shape: f32[1,384], index: 5, kind: input, shape index: {}]   ;;  %s1946_s6 = inlined_call_operand.hbm [shape: f32[1,384], index: 6, kind: input, shape index: {}]   ;;  %s1947_s7 = inlined_call_operand.hbm [shape: f32[16,384], index: 7, kind: output, shape index: {}]  }
   0x1   :  { %1959 = sst [smem:[#allocation25_spill]] %s1940_s0 }
   0x2   :  { %1960 = sst [smem:[#allocation26_spill]] %s1941_s1 }
   0x3   :  { %1961 = sst [smem:[#allocation27_spill]] %s1942_s2 }
   0x4   :  { %1962 = sst [smem:[#allocation28_spill]] %s1943_s3 }
   0x5   :  { %1963 = sst [smem:[#allocation29_spill]] %s1947_s7 }
   0x6   :  { %12 = vsyncpa [#allocation3], 0 }
   0x7   :  { %13 = vsyncpa [#allocation6], 0 }
   0x8   :  { %15 = vsyncpa [#allocation6 + $0x1], 0 }
   0x9   :  { %16 = vsyncpa [#allocation9], 0 }
   0xa   :  { %17 = vsyncpa [#allocation4], 0 }
   0xb   :  { %19 = vsyncpa [#allocation4 + $0x1], 0  ;;  %s1684_s24 = smov 0   ;;  %s1686_s25 = smov 0  }
   0xc   :  { %s1688_s26 = smov 0   ;;  %s1690_s27 = smov 0  }
   0xd   :  { %s1692_s28 = smov 0   ;;  %s1694_s29 = smov 0  }
   0xe LB: > { %1964 = sst [smem:[#allocation19_spill]] %s1612_s24  ;;  %s40_s30 = sadd.s32 1, %s1628_s28  ;;  %s1632_s29 = sphi %s1694_s29, %s25_s29   ;;  %s1628_s28 = sphi %s1692_s28, %s1994_s28   ;;  %s1624_s27 = sphi %s1690_s27, %s1993_s27   ;;  %s1620_s26 = sphi %s1688_s26, %s1989_s26   ;;  %s1616_s25 = sphi %s1686_s25, %s1992_s25   ;;  %s1612_s24 = sphi %s1684_s24, %s1991_s24  }
   0xf   : > { %1965 = sst [smem:[#allocation20_spill]] %s1620_s26  ;;  %s81_s8 = sadd.s32 1, %s1620_s26 }
  0x10   : > { %p42_p0 = scmp.ge.s32.totalorder %s40_s30, 3  ;;  %p88_p1 = scmp.ne.s32.totalorder %s1620_s26, %s1616_s25 }
  0x11   : > { %p89_p2 = scmp.eq.s32.totalorder %s1632_s29, 0  ;;  %p1290_p4 = scmp.lt.s32.totalorder %s1632_s29, 3 }
  0x12   : > { %s1996_s30 = smov (%p42_p0, %s40_s30), 0  ;;  %s1948_s11 = sand.u32 1, %s1632_s29  }
  0x13   : > { %1966 = sst [smem:[#allocation21_spill]] %s1996_s30  ;;  %p1724_p3 = por %p89_p2, %p88_p1 }
  0x14   : > { %s77_s10 = ssub.s32 %s1628_s28, %s1996_s30  ;;  %s1733_s12 = sand.u32 1, %s1620_s26  }
  0x15   : > { %p79_p5 = scmp.eq.s32.totalorder %s77_s10, 0  ;;  %s1073_s13 = sshll.u32 %s1628_s28, 2 }
  0x16   : > { %s1072_s15 = sshll.u32 %s1733_s12, 7  ;;  %s1969_s1 = sld [smem:[#allocation26_spill]] }
  0x17   : > { %s1737_s14 = scalar_select %p79_p5, %s1620_s26, %s81_s8  }
  0x18   : > { %s316_s20 = scalar_lea.vmem [#allocation5], %s1072_s15  ;;  %p1747_p6 = pnand %p1290_p4, %p1724_p3 }
  0x19   : > { %1968 = sst [smem:[#allocation22_spill]] %s1737_s14  ;;  %s326_s21 = sshll.u32 %s316_s20, 4  ;;  %s327_s21 = int_to_ptr.vmem [resolvable:$true] %s326_s21 }
  0x1a   : > { %s1753_s23 = scalar_lea.sflag [#allocation6], %s1948_s11  ;;  %s1950_s8 = smov 192  }
  0x1b   : > { %s1951_s10 = smov 64   ;;  %s1952_s16 = smov 4  }
  0x1c   : > { %s323_s18 = scalar_lea.hbm %s1969_s1, %s1073_s13  ;;  %s1971_s2 = sld [smem:[#allocation27_spill]] }
  0x1d   : > { %s324_s19 = sshll.u32 %s323_s18, 4  ;;  %s340_s11 = scalar_lea.vmem [#allocation7], %s1072_s15  ;;  %s325_s19 = int_to_ptr.hbm [resolvable:$true] %s324_s19 }
  0x1e   : > { %1274 = dma.hbm_to_vmem [thread:$0]  (!%p1747_p6), %s325_s19, 2048, %s327_s21, %s1753_s23, %s1950_s8, %s1951_s10, %s1952_s16  }
  0x1f   : > { %s350_s1 = sshll.u32 %s340_s11, 4  ;;  %s1765_s30 = sadd.s32 4294967295, %s1632_s29   ;;  %s351_s1 = int_to_ptr.vmem [resolvable:$true] %s350_s1 }
  0x20   : > { %s1067_s14 = sadd.s32 4294967294, %s1632_s29   ;;  %p94_p7 = scmp.ne.s32.totalorder %s1616_s25, %s1612_s24 }
  0x21   : > { %p95_p8 = scmp.eq.s32.totalorder %s1765_s30, 0  ;;  %p252_p9 = scmp.eq.s32.totalorder %s1765_s30, 2 }
  0x22   : > { %s347_s18 = scalar_lea.hbm %s1971_s2, %s1073_s13  ;;  %p258_p10 = scmp.eq.s32.totalorder %s1067_s14, 2 }
  0x23   : > { %s348_s20 = sshll.u32 %s347_s18, 4  ;;  %p1774_p11 = por %p95_p8, %p94_p7  ;;  %s349_s20 = int_to_ptr.hbm [resolvable:$true] %s348_s20 }
  0x24   : > { %p1068_p12 = scmp.ge.s32.totalorder %s1632_s29, 1  ;;  %p1782_p13 = por %p252_p9, %p88_p1 }
  0x25   : > { %p1786_p0 = por %p258_p10, %p94_p7  ;;  %p265_p2 = scmp.lt.s32.totalorder %s1632_s29, 4 }
  0x26   : > { %s1973_s11 = scalar_select %p1782_p13, 1, 0 }
  0x27   : > { %s1975_s15 = scalar_select %p1786_p0, 1, 0 }
  0x28   : > { %1974 = sst [smem:[#allocation23_spill]] %s1973_s11  ;;  %p1794_p3 = pnand %p1068_p12, %p265_p2 }
  0x29   : > { %1976 = sst [smem:[#allocation24_spill]] %s1975_s15  ;;  %s1637_s17 = smov [#allocation2]  }
  0x2a   : > { %s1977_s0 = sld [smem:[#allocation25_spill]]  ;;  %s284_s18 = sshll.u32 %s1637_s17, 4  ;;  %s285_s18 = int_to_ptr.vmem [resolvable:$true] %s284_s18 }
  0x2b   : > { %p1264_p1 = pneg %p1794_p3  ;;  %s1979_s3 = sld [smem:[#allocation28_spill]] }
  0x2c   : > { %s1980_s19 = smov 4   ;;  %s1981_s14 = smov 64  }
  0x2d   : > { %p1265_p4 = pnand %p1264_p1, %p95_p8  ;;  %s1638_s2 = smov 256  }
  0x2e   : > { %s1639_s17 = smov 16   ;;  %s1640_s26 = smov [#allocation8]  }
  0x2f   : > { %s301_s15 = sshll.u32 %s1640_s26, 4  ;;  %s369_s24 = scalar_lea.vmem [#allocation10], %s1733_s12  ;;  %s302_s15 = int_to_ptr.vmem [resolvable:$true] %s301_s15 }
  0x30   : > { %s282_s21 = sshll.u32 %s1977_s0, 4  ;;  %s1982_s0 = smov 192   ;;  %s283_s21 = int_to_ptr.hbm [resolvable:$true] %s282_s21 }
  0x31   : > { %s299_s16 = sshll.u32 %s1979_s3, 4  ;;  %s372_s3 = scalar_lea.hbm %s1945_s5, %s1628_s28  ;;  %s300_s16 = int_to_ptr.hbm [resolvable:$true] %s299_s16 }
  0x32   : > { %1277 = dma.hbm_to_vmem [thread:$0]  (!%p1747_p6), %s349_s20, 2048, %s351_s1, %s1753_s23, %s1982_s0, %s1981_s14, %s1980_s19  }
  0x33   : > { %1267 = dma.hbm_to_vmem [thread:$0]  (!%p1265_p4), %s283_s21, 512, %s285_s18, [#allocation3], %s1638_s2, %s1638_s2, %s1639_s17  }
  0x34   : > { %1270 = dma.hbm_to_vmem [thread:$0]  (!%p1265_p4), %s300_s16, 32, %s302_s15, [#allocation9]  }
  0x35   : > { %s376_s11 = sshll.u32 %s369_s24, 4  ;;  %s374_s7 = sshll.u32 %s372_s3, 4  ;;  %s377_s11 = int_to_ptr.vmem [resolvable:$true] %s376_s11  ;;  %s375_s7 = int_to_ptr.hbm [resolvable:$true] %s374_s7 }
  0x36   : > { %s1983_s0 = sand.u32 1, %s1632_s29   ;;  %s389_s26 = scalar_lea.hbm %s1946_s6, %s1628_s28 }
  0x37   : > { %s367_s1 = scalar_lea.sflag [#allocation3], %s1983_s0  ;;  %s386_s21 = scalar_lea.vmem [#allocation11], %s1733_s12 }
  0x38   : > { %1280 = dma.hbm_to_vmem [thread:$0]  (!%p1747_p6), %s375_s7, 16, %s377_s11, %s367_s1  }
  0x39   : > { %s393_s18 = sshll.u32 %s386_s21, 4  ;;  %s391_s16 = sshll.u32 %s389_s26, 4  ;;  %s394_s18 = int_to_ptr.vmem [resolvable:$true] %s393_s18  ;;  %s392_s16 = int_to_ptr.hbm [resolvable:$true] %s391_s16 }
  0x3a   : > { %1283 = dma.hbm_to_vmem [thread:$0]  (!%p1747_p6), %s392_s16, 16, %s394_s18, %s1753_s23  }
  0x3b   : > { %402 = sbr.rel (%p1794_p3) target bundleno = 260 (0x104), region = 48 }
  0x40   : > { %1587 = dma.done.wait (%p95_p8), [#allocation3], 512  }
  0x41   : > { %1589 = vsyncadd (%p95_p8), [#allocation3], 4294966784  ;;  %s409_s3 = sand.u32 1, %s1765_s30   ;;  %s1836_s7 = sand.u32 1, %s1616_s25  }
  0x42   : > { %s1078_s24 = sshll.u32 %s1836_s7, 7  ;;  %s410_s12 = scalar_lea.sflag [#allocation6], %s409_s3 }
  0x43   : > { %s1839_s22 = scalar_lea.vmem [#allocation5], %s1078_s24 }
  0x44   : > { %1591 = dma.done.wait (%p1774_p11), %s410_s12, 4096  }
  0x45   : > { %1593 = vsyncadd (%p1774_p11), %s410_s12, 4294963200  ;;  %s1845_s23 = scalar_lea.vmem [#allocation7], %s1078_s24 }
  0x46   : > { %1595 = dma.done.wait (%p95_p8), [#allocation9], 32  }
  0x47   : > { %1597 = vsyncadd (%p95_p8), [#allocation9], 4294967264  ;;  %s435_s11 = scalar_lea.sflag [#allocation3], %s409_s3  ;;  %s437_s15 = scalar_lea.vmem [#allocation10], %s1836_s7 }
  0x48   : > { %1599 = dma.done.wait (%p1774_p11), %s435_s11, 16  }
  0x49   : > { %1601 = vsyncadd (%p1774_p11), %s435_s11, 4294967280  ;;  %s446_s9 = scalar_lea.vmem [#allocation11], %s1836_s7 }
  0x4a   : > { %1603 = dma.done.wait (%p1774_p11), %s410_s12, 16  }
  0x4b   : > { %1605 = vsyncadd (%p1774_p11), %s410_s12, 4294967280  ;;  %v1237_v0 = vld [vmem:[%s1845_s23 + $0x38] sm:$0xff]  ;;  %v1236_v4 = vld [vmem:[%s1845_s23 + $0x30] sm:$0xff]  ;;  %p499_p5 = scmp.lt.s32.totalorder %s1624_s27, 2  ;;  %s1081_s17 = sshll.u32 %s1836_s7, 4 }
  0x4c   : > { %v1245_v1 = vld [vmem:[%s1845_s23 + $0x78] sm:$0xff]  ;;  %687 = vmatpush.bf16.msra.mxu0 %v1237_v0  ;;  %v1244_v5 = vld [vmem:[%s1845_s23 + $0x70] sm:$0xff]  ;;  %v1235_v8 = vld [vmem:[%s1845_s23 + $0x28] sm:$0xff]  ;;  %s1211_s8 = sshll.u32 %s1624_s27, 3  ;;  %s1984_s1 = sld [smem:[#allocation29_spill]] }
  0x4d   : > { %v1221_v2 = vld [vmem:[%s1839_s22 + $0x38] sm:$0xff]  ;;  %701 = vmatpush.bf16.msra.mxu1 %v1245_v1  ;;  %v1220_v6 = vld [vmem:[%s1839_s22 + $0x30] sm:$0xff]  ;;  %v1243_v9 = vld [vmem:[%s1845_s23 + $0x68] sm:$0xff]  ;;  %s500_s30 = scalar_select %p499_p5, %s1624_s27, 2 }
  0x4e   : > { %v1229_v3 = vld [vmem:[%s1839_s22 + $0x78] sm:$0xff]  ;;  %819 = vmatpush.bf16.msra.mxu2 %v1221_v2  ;;  %v1228_v7 = vld [vmem:[%s1839_s22 + $0x70] sm:$0xff]  ;;  %v1219_v10 = vld [vmem:[%s1839_s22 + $0x28] sm:$0xff]  ;;  %s493_s20 = scalar_lea.vmem [#allocation12], %s1081_s17  ;;  %s869_s27 = scalar_lea.sflag [#allocation4], %s1836_s7 }
  0x4f   : > { %833 = vmatpush.bf16.msra.mxu3 %v1229_v3  ;;  %v1227_v11 = vld [vmem:[%s1839_s22 + $0x68] sm:$0xff]  ;;  %v1234_v12 = vld [vmem:[%s1845_s23 + $0x20] sm:$0xff]  ;;  %v1233_v16 = vld [vmem:[%s1845_s23 + $0x18] sm:$0xff]  ;;  %s501_s14 = scalar_lea.vmem %s1944_s4, %s500_s30  ;;  %s883_s21 = sshll.u32 %s493_s20, 4  ;;  %s884_s21 = int_to_ptr.vmem [resolvable:$true] %s883_s21 }
  0x50   : > { %688 = vmatpush.bf16.msra.mxu0 %v1236_v4  ;;  %v1242_v13 = vld [vmem:[%s1845_s23 + $0x60] sm:$0xff]  ;;  %v1241_v17 = vld [vmem:[%s1845_s23 + $0x58] sm:$0xff]  ;;  %v1232_v20 = vld [vmem:[%s1845_s23 + $0x10] sm:$0xff] }
  0x51   : > { %702 = vmatpush.bf16.msra.mxu1 %v1244_v5  ;;  %v1218_v14 = vld [vmem:[%s1839_s22 + $0x20] sm:$0xff]  ;;  %v1217_v18 = vld [vmem:[%s1839_s22 + $0x18] sm:$0xff]  ;;  %v1240_v21 = vld [vmem:[%s1845_s23 + $0x50] sm:$0xff] }
  0x52   : > { %820 = vmatpush.bf16.msra.mxu2 %v1220_v6  ;;  %v1226_v15 = vld [vmem:[%s1839_s22 + $0x60] sm:$0xff]  ;;  %v1225_v19 = vld [vmem:[%s1839_s22 + $0x58] sm:$0xff]  ;;  %v1216_v23 = vld [vmem:[%s1839_s22 + $0x10] sm:$0xff]  ;;  %s882_s2 = scalar_lea.hbm %s1984_s1, %s1211_s8 }
  0x53   : > { %834 = vmatpush.bf16.msra.mxu3 %v1228_v7  ;;  %v513_v22 = vld [vmem:[#allocation8] sm:$0x3]  ;;  %v1224_v24 = vld [vmem:[%s1839_s22 + $0x50] sm:$0xff]  ;;  %v1231_v25 = vld [vmem:[%s1845_s23 + $0x8] sm:$0xff]  ;;  %s885_s18 = sshll.u32 %s882_s2, 4  ;;  %s886_s18 = int_to_ptr.hbm [resolvable:$true] %s885_s18 }
  0x54   : > { %689 = vmatpush.bf16.msra.mxu0 %v1235_v8  ;;  %v1239_v26 = vld [vmem:[%s1845_s23 + $0x48] sm:$0xff]  ;;  %v509_v27 = vld [vmem:[#allocation2] sm:$0xff]  ;;  %v515_v28 = vperm.slane %v513_v22, 0  ;;  %v516_v29 = vperm.slane %v513_v22, 1  ;;  %v511_v30 = vld [vmem:[#allocation2 + $0x10] sm:$0xff]  ;;  %s1548_s16 = sshra.s32 %s886_s18, 4  ;;  %s1549_s16 = int_to_ptr.hbm [resolvable:$true] %s1548_s16 }
  0x55   : > { %703 = vmatpush.bf16.msra.mxu1 %v1243_v9  ;;  %v510_v31 = vld [vmem:[#allocation2 + $0x8] sm:$0xff]  ;;  %v512_v32 = vld [vmem:[#allocation2 + $0x18] sm:$0xff]  ;;  %v1230_v39 = vld [vmem:[%s1845_s23] sm:$0xff]  ;;  %v523_v45 = vpack.c.bf16 %v511_v30, %v509_v27  ;;  %s1550_s3 = scalar_lea.hbm %s1549_s16, 16  ;;  %p1555_p9 = scmp.lt.s32.totalorder %s1549_s16, %s1984_s1 }
  0x56   : > { %821 = vmatpush.bf16.msra.mxu2 %v1219_v10  ;;  %v1215_v33 = vld [vmem:[%s1839_s22 + $0x8] sm:$0xff]  ;;  %v519_v35 = vmul.f32 %v515_v28, %v509_v27  ;;  %v521_v36 = vmul.f32 %v515_v28, %v511_v30  ;;  %v520_v37 = vmul.f32 %v516_v29, %v510_v31  ;;  %v522_v38 = vmul.f32 %v516_v29, %v512_v32  ;;  %v1238_v40 = vld [vmem:[%s1845_s23 + $0x40] sm:$0xff]  ;;  %p1551_p6 = scmp.ne.s32.totalorder %s1549_s16, %s1550_s3 }
  0x57   : > { %835 = vmatpush.bf16.msra.mxu3 %v1227_v11  ;;  %v1223_v34 = vld [vmem:[%s1839_s22 + $0x48] sm:$0xff]  ;;  %v1214_v41 = vld [vmem:[%s1839_s22] sm:$0xff]  ;;  %v524_v46 = vpack.c.bf16 %v512_v32, %v510_v31 }
  0x58   : > { %690 = vmatpush.bf16.msra.mxu0 %v1234_v12  ;;  %v1222_v42 = vld [vmem:[%s1839_s22 + $0x40] sm:$0xff]  ;;  %v525_v43 = vpack.c.bf16 %v521_v36, %v519_v35  ;;  %v526_v44 = vpack.c.bf16 %v522_v38, %v520_v37  ;;  %p1552_p7 = pnand %p1551_p6, %p1782_p13  ;;  %s1554_s22 = scalar_lea.hbm %s1984_s1, 48 }
  0x59   : > { %704 = vmatpush.bf16.msra.mxu1 %v1242_v13  ;;  %v857_v47 = vld [vmem:[%s446_s9] sm:$0x1]  ;;  %p1556_p10 = scmp.lt.s32.totalorder %s1554_s22, %s1550_s3 }
  0x5a   : > { %822 = vmatpush.bf16.msra.mxu2 %v1218_v14  ;;  %v858_v48 = vld [vmem:[%s501_s14] sm:$0x1]  ;;  %p1553_p8 = pneg %p1552_p7 }
  0x5b   : > { %836 = vmatpush.bf16.msra.mxu3 %v1226_v15  ;;  %v1353_v51 = vld [vmem:[%s501_s14] ss:$0 sm:$0xff]  ;;  %v859_v53 = vmul.f32 %v858_v48, %v857_v47  ;;  %p1557_p11 = por %p1556_p10, %p1555_p9 }
  0x5c   : > { %691 = vmatpush.bf16.msra.mxu0 %v1233_v16  ;;  %v856_v54 = vld [vmem:[%s437_s15] sm:$0x1] }
  0x5d   : > { %705 = vmatpush.bf16.msra.mxu1 %v1241_v17  ;;  %v860_v56 = vadd.f32 %v859_v53, %v856_v54  ;;  %p1558_p12 = pnand %p1557_p11, %p1553_p8 }
  0x5e   : > { %823 = vmatpush.bf16.msra.mxu2 %v1217_v18 }
  0x5f   : > { %837 = vmatpush.bf16.msra.mxu3 %v1225_v19  ;;  %v862_v62 = vperm.slane %v860_v56, 0 }
  0x60   : > { %692 = vmatpush.bf16.msra.mxu0 %v1232_v20 }
  0x61   : > { %706 = vmatpush.bf16.msra.mxu1 %v1240_v21 }
  0x62   : > { %824 = vmatpush.bf16.msra.mxu2 %v1216_v23 }
  0x63   : > { %838 = vmatpush.bf16.msra.mxu3 %v1224_v24 }
  0x64   : > { %693 = vmatpush.bf16.msra.mxu0 %v1231_v25 }
  0x65   : > { %707 = vmatpush.bf16.msra.mxu1 %v1239_v26 }
  0x66   : > { %825 = vmatpush.bf16.msra.mxu2 %v1215_v33 }
  0x67   : > { %839 = vmatpush.bf16.msra.mxu3 %v1223_v34 }
  0x68   : > { %694 = vmatpush.bf16.msra.mxu0 %v1230_v39 }
  0x69   : > { %708 = vmatpush.bf16.msra.mxu1 %v1238_v40 }
  0x6a   : > { %826 = vmatpush.bf16.msra.mxu2 %v1214_v41 }
  0x6b   : > { %840 = vmatpush.bf16.msra.mxu3 %v1222_v42  ;;  %695 = vmatmul.bf16.vlgmr.msra.gmra.mxu0 %v525_v43 }
  0x6c   : > { %709 = vmatmul.bf16.vlgmr.msra.gmra.mxu1 %v526_v44 }
  0x6d   : > { %827 = vmatmul.bf16.vlgmr.msra.gmra.mxu2 %v523_v45 }
  0x6e   : > { %841 = vmatmul.bf16.vlgmr.msra.gmra.mxu3 %v524_v46 }
  0xe8   : > { %v696_v49 = vpop.f32.mrf.mxu0 }
  0xe9   : > { %v710_v50 = vpop.f32.mrf.mxu1 }
  0xea   : > { %v711_v52 = vadd.f32 %v710_v50, %v696_v49 }
  0xec   : > { %v721_v55 = vmul.f32 %v1353_v51, %v711_v52 }
  0xf0   : > { %v828_v57 = vpop.f32.mrf.mxu2  ;;  %v698_v60 = vpop.f32.mrf.mxu0 }
  0xf1   : > { %v842_v58 = vpop.f32.mrf.mxu3  ;;  %v829_v59 = vadd.f32 %v828_v57, %v721_v55  ;;  %v712_v61 = vpop.f32.mrf.mxu1 }
  0xf2   : > { %v713_v0 = vadd.f32 %v712_v61, %v698_v60 }
  0xf3   : > { %v843_v63 = vadd.f32 %v842_v58, %v829_v59 }
  0xf4   : > { %v722_v2 = vmul.f32 %v1353_v51, %v713_v0 }
  0xf5   : > { %v864_v1 = vadd.f32 %v862_v62, %v843_v63 }
  0xf7   : > { %866 = vst [vmem:[%s493_s20] sm:$0xff] %v864_v1 }
  0xf8   : > { %v830_v3 = vpop.f32.mrf.mxu2 }
  0xf9   : > { %v831_v4 = vadd.f32 %v830_v3, %v722_v2  ;;  %v844_v5 = vpop.f32.mrf.mxu3 }
  0xfb   : > { %v845_v6 = vadd.f32 %v844_v5, %v831_v4 }
  0xfd   : > { %v865_v7 = vadd.f32 %v862_v62, %v845_v6 }
  0xff   : > { %867 = vst [vmem:[%s493_s20 + $0x8] sm:$0xff] %v865_v7 }
 0x100   : > { %1561 = shalt.err (!%p1558_p12)
}
 0x101   : > { %s1641_s7 = smov 128   ;;  %s1642_s15 = smov 384  }
 0x102   : > { %s1643_s9 = smov 8  }
 0x103   : > { %1262 = dma.vmem_to_hbm [thread:$0]  (%p1782_p13), %s884_s21, 256, %s886_s18, %s869_s27, %s1641_s7, %s1642_s15, %s1643_s9  }
 0x104 PF: > { %s1986_s30 = sld [smem:[#allocation19_spill]]  ;;  %p1293_p2 = scmp.ge.s32.totalorder %s1632_s29, 2 }
 0x106   : > { %p1285_p3 = pnand %p1293_p2, %p1786_p0 }
 0x108   : > { %p1286_p1 = pneg %p1285_p3 }
 0x10a   : > { %s900_s19 = sand.u32 1, %s1986_s30  }
 0x10b   : > { %s901_s14 = scalar_lea.sflag [#allocation4], %s900_s19 }
 0x10c   : > { %1607 = dma.done.wait (%p1286_p1), %s901_s14, 256  }
 0x10d   : > { %1609 = vsyncadd (%p1286_p1), %s901_s14, 4294967040  ;;  %s25_s29 = sadd.s32 1, %s1632_s29   ;;  %s1988_s17 = sld [smem:[#allocation20_spill]] }
 0x10e   : > { %p22_p4 = scmp.ge.s32.totalorder %s25_s29, 5   ;;  %s1989_s26 = sld [smem:[#allocation22_spill]] }
 0x10f   : > { %s1990_s8 = sld [smem:[#allocation21_spill]]  ;;  %s1991_s24 = smov %s1616_s25 }
 0x110   : > { %s1993_s27 = smov %s1628_s28 }
 0x111   :  { %24 = sbr.rel (!%p22_p4) target bundleno = 14 (0xe), region = 148 }
 0x113   : > { %s1992_s25 = smov %s1988_s17 }
 0x115   : > { %s1994_s28 = smov %s1990_s8 }
 0x116   :  { %907 = vsyncpa [#allocation3], 1 }
 0x117   :  { %909 = vsyncpa [#allocation3 + $0x1], 1 }
 0x118   :  { %910 = vsyncpa [#allocation6], 1 }
 0x119   :  { %912 = vsyncpa [#allocation6 + $0x1], 1 }
 0x11a   :  { %913 = vsyncpa [#allocation9], 1 }
 0x11b   :  { %914 = vsyncpa [#allocation4], 1 }
 0x11c   :  { %916 = vsyncpa [#allocation4 + $0x1], 1 }

</bundles_post_ra>
